<compile_context>
chip_gen: v5e
topology: v5e:2x2
jax: 0.10.0
libtpu: 0.0.40
codegen_flags: <defaults>
</compile_context>

<pallas_src>
import functools

import jax
import jax.numpy as jnp
from jax.experimental import pallas as pl
from jax.experimental.pallas import tpu as pltpu


# ----------------------------- sizing helpers --------------------------------

def _vmem_budget():
    """(per-block VMEM footprint budget, scoped vmem_limit_bytes) for this chip."""
    try:
        info = pltpu.get_tpu_info()
        cap = int(getattr(info, "vmem_capacity_bytes", 0)) or 64 * 1024 * 1024
    except Exception:
        cap = 64 * 1024 * 1024                      # conservative (v7x) fallback
    vmem_limit = min(cap // 2, 64 * 1024 * 1024)    # 32 MiB on v7x, 64 MiB on v5e/v6e
    block_budget = vmem_limit // 2                  # headroom for Mosaic scratch
    return block_budget, vmem_limit


def _choose_tiles(B, N, bytes_per_lane, budget):
    """Pick (tile_b, tile_n) for blocks of shape (tile_b, channels, tile_n).

    `bytes_per_lane` is the full VMEM footprint per flattened spatial lane for
    ONE batch element (double-buffered in/out blocks + f32 accumulator/temps).
    """
    lanes_budget = max(128, budget // max(int(bytes_per_lane), 1))
    if N > lanes_budget:
        tile_b = 1
        tile_n = min(N, max(128, (lanes_budget // 128) * 128))
    else:
        tile_n = N
        tile_b = max(1, min(B, lanes_budget // max(N, 1)))
        while B % tile_b:                           # keep batch blocks exact
            tile_b -= 1
    # Megacore (v7x has 2 TensorCores): keep >=2 grid steps when possible.
    if pl.cdiv(B, tile_b) * pl.cdiv(N, tile_n) < 2:
        if B >= 2:
            tile_b = max(1, tile_b // 2)
            while B % tile_b:
                tile_b -= 1
        elif N >= 256:
            tile_n = max(128, ((N // 2) // 128) * 128)
    return tile_b, tile_n


def _flat_coords(spatial_block, tile_n, H, W):
    """xx / yy coordinate rows (float32, shape (1, tile_n)) for one flattened
    H*W spatial tile, generated on-chip (no HBM traffic, no integer division)."""
    lane = jax.lax.broadcasted_iota(jnp.int32, (1, tile_n), 1)
    idx = spatial_block * tile_n + lane             # global flat index = y*W + x
    if W > 0 and (W & (W - 1)) == 0:                # power-of-two W: shift/mask
        y = jnp.right_shift(idx, W.bit_length() - 1)
        x_col = jnp.bitwise_and(idx, W - 1)
    else:                                           # f32 reciprocal + exact fix-up
        y = jnp.floor(idx.astype(jnp.float32) * jnp.float32(1.0 / W)).astype(jnp.int32)
        for _ in range(2):                          # branchless correction (VPU only)
            r = idx - y * W
            y = y + (r >= W).astype(jnp.int32) - (r < 0).astype(jnp.int32)
        x_col = idx - y * W
    # NOTE: divide-by-zero -> inf/nan when H == 1 or W == 1, same as PyTorch.
    xx = (y.astype(jnp.float32) / jnp.float32(H - 1)) * 2.0 - 1.0
    yy = (x_col.astype(jnp.float32) / jnp.float32(W - 1)) * 2.0 - 1.0
    return xx, yy


# ----------------------------- AddCoordinates --------------------------------

def _add_coords_kernel(x_ref, o_ref, *, C, H, W, tile_n, with_r):
    tb = o_ref.shape[0]
    # Input channels: streamed copy (cast only if out_dtype differs).
    o_ref[:, :C, :] = x_ref[...].astype(o_ref.dtype)
    # Coordinate channels: one stacked store, broadcast across the batch sub-axis.
    xx, yy = _flat_coords(pl.program_id(1), tile_n, H, W)
    coords = [xx, yy]
    if with_r:
        coords.append(jnp.sqrt((xx - 0.5) ** 2 + (yy - 0.5) ** 2))
    coord_blk = jnp.concatenate(coords, axis=0).astype(o_ref.dtype)    # (ncoord, tile_n)
    o_ref[:, C:, :] = jnp.broadcast_to(coord_blk[None], (tb, len(coords), tile_n))


def add_coordinates(x: jax.Array, with_r: bool = False, out_dtype=None) -> jax.Array:
    """Pallas AddCoordinates.forward: (B, C, H, W) -> (B, C+2(+1), H, W)."""
    B, C, H, W = x.shape
    out_dtype = jnp.dtype(out_dtype) if out_dtype is not None else jnp.dtype(x.dtype)
    n_coord = 2 + (1 if with_r else 0)
    c_out = C + n_coord
    N = H * W
    in_isz = jnp.dtype(x.dtype).itemsize
    out_isz = out_dtype.itemsize

    budget, vmem_limit = _vmem_budget()
    bytes_per_lane = 2 * C * in_isz + 2 * c_out * out_isz + 8   # dbl-buffered + temps
    tile_b, tile_n = _choose_tiles(B, N, bytes_per_lane, budget)

    ce = pl.CostEstimate(
        flops=int(6 * B * N),
        transcendentals=int(B * N) if with_r else 0,
        bytes_accessed=int(B * C * N * in_isz + B * c_out * N * out_isz))

    out = pl.pallas_call(
        functools.partial(_add_coords_kernel, C=C, H=H, W=W,
                          tile_n=tile_n, with_r=with_r),
        out_shape=jax.ShapeDtypeStruct((B, c_out, N), out_dtype),
        grid=(pl.cdiv(B, tile_b), pl.cdiv(N, tile_n)),
        in_specs=[pl.BlockSpec((tile_b, C, tile_n), lambda b, s: (b, 0, s))],
        out_specs=pl.BlockSpec((tile_b, c_out, tile_n), lambda b, s: (b, 0, s)),
        compiler_params=pltpu.CompilerParams(
            dimension_semantics=("parallel", "parallel"),
            vmem_limit_bytes=vmem_limit),
        cost_estimate=ce,
    )(x.reshape(B, C, N))
    return out.reshape(B, c_out, H, W)


# ------------------ fused AddCoordinates + 1x1 conv kernels ------------------

def _coord_part(w, b, C, xx, yy, with_r):
    """Bias + coordinate-channel contribution, shape (O, tile_n), f32."""
    cpart = b + w[:, C:C + 1] * xx + w[:, C + 1:C + 2] * yy
    if with_r:
        rr = jnp.sqrt((xx - 0.5) ** 2 + (yy - 0.5) ** 2)
        cpart = cpart + w[:, C + 2:C + 3] * rr
    return cpart


def _coordconv1x1_fma_kernel(x_ref, w_ref, b_ref, o_ref, *, C, H, W, tile_n, with_r):
    """Small-C path: C unrolled rank-1 VPU FMAs (no MXU push/pop, no big f32 temp)."""
    tb, O, _ = o_ref.shape
    xx, yy = _flat_coords(pl.program_id(1), tile_n, H, W)
    w = w_ref[...]                                   # (O, c_tot) f32
    cpart = _coord_part(w, b_ref[...], C, xx, yy, with_r)          # (O, tile_n)
    acc = jnp.broadcast_to(cpart[None], (tb, O, tile_n))
    for c in range(C):                               # unrolled, C is small here
        acc = acc + w[:, c:c + 1][None] * x_ref[:, c:c + 1, :].astype(jnp.float32)
    o_ref[...] = acc.astype(o_ref.dtype)


def _coordconv1x1_mxu_kernel(x_ref, w_ref, b_ref, o_ref, *, C, H, W, tile_n, with_r):
    """Large-C path: native-dtype MXU matmul with f32 accumulation."""
    tb, O, _ = o_ref.shape
    xx, yy = _flat_coords(pl.program_id(1), tile_n, H, W)
    w = w_ref[...]                                   # (O, c_tot) f32
    cpart = _coord_part(w, b_ref[...], C, xx, yy, with_r)          # (O, tile_n)
    wc = w[:, :C].astype(x_ref.dtype)                # tiny cast; native-dtype MXU
    prec = jax.lax.Precision.HIGHEST if x_ref.dtype == jnp.float32 else None
    for i in range(tb):                              # unrolled; tb is 1 for large C
        acc = jnp.dot(wc, x_ref[i], precision=prec,
                      preferred_element_type=jnp.float32)          # (O, tile_n)
        o_ref[i] = (acc + cpart).astype(o_ref.dtype)


def coord_conv_net(x, weight, bias, *, with_r=False, stride=1, padding=0):
    """CoordConvNet.forward = AddCoordinates + Conv2d (weight in OIHW layout).

    For the module defaults (kernel_size=1, stride=1, padding=0) the coordinate
    injection and the 1x1 convolution are fused into one Pallas kernel, so the
    coordinate channels never touch HBM.
    """
    B, C, H, W = x.shape
    O, c_tot, kH, kW = weight.shape
    n_coord = 2 + (1 if with_r else 0)
    assert c_tot == C + n_coord, "weight channel mismatch"

    if not (kH == 1 and kW == 1 and stride == 1 and padding == 0):
        # TODO(synk): general kernel_size/stride/padding Conv2d is left to XLA;
        # only the coordinate injection runs as a Pallas kernel on this path.
        xc = add_coordinates(x, with_r=with_r, out_dtype=jnp.float32)
        out = jax.lax.conv_general_dilated(
            xc, weight.astype(jnp.float32), window_strides=(stride, stride),
            padding=[(padding, padding), (padding, padding)],
            dimension_numbers=("NCHW", "OIHW", "NCHW"))
        return (out + bias.astype(jnp.float32)[None, :, None, None]).astype(x.dtype)

    N = H * W
    in_isz = jnp.dtype(x.dtype).itemsize
    out_isz = in_isz

    budget, vmem_limit = _vmem_budget()
    # Per-lane footprint: double-buffered in/out blocks + f32 acc + one f32 temp.
    bytes_per_lane = 2 * C * in_isz + 2 * O * out_isz + 8 * O + 16
    tile_b, tile_n = _choose_tiles(B, N, bytes_per_lane, budget)

    kern = _coordconv1x1_mxu_kernel if C > 16 else _coordconv1x1_fma_kernel
    ce = pl.CostEstimate(
        flops=int(2 * B * O * c_tot * N + B * O * N),
        transcendentals=int(B * N) if with_r else 0,
        bytes_accessed=int(B * C * N * in_isz + B * O * N * out_isz
                           + O * c_tot * 4 + O * 4))

    out = pl.pallas_call(
        functools.partial(kern, C=C, H=H, W=W, tile_n=tile_n, with_r=with_r),
        out_shape=jax.ShapeDtypeStruct((B, O, N), x.dtype),
        grid=(pl.cdiv(B, tile_b), pl.cdiv(N, tile_n)),
        in_specs=[
            pl.BlockSpec((tile_b, C, tile_n), lambda b, s: (b, 0, s)),
            pl.BlockSpec((O, c_tot), lambda b, s: (0, 0)),
            pl.BlockSpec((O, 1), lambda b, s: (0, 0)),
        ],
        out_specs=pl.BlockSpec((tile_b, O, tile_n), lambda b, s: (b, 0, s)),
        compiler_params=pltpu.CompilerParams(
            dimension_semantics=("parallel", "parallel"),
            vmem_limit_bytes=vmem_limit),
        cost_estimate=ce,
    )(x.reshape(B, C, N),
      weight.reshape(O, c_tot).astype(jnp.float32),
      bias.reshape(O, 1).astype(jnp.float32))
    return out.reshape(B, O, H, W)


# --------------------------- plain-JAX references ----------------------------

def _reference_add_coords(x, with_r=False):
    B, C, H, W = x.shape
    rows = jnp.arange(H, dtype=jnp.float32)[:, None]
    cols = jnp.arange(W, dtype=jnp.float32)[None, :]
    xx = jnp.broadcast_to(rows, (H, W)) / (H - 1) * 2.0 - 1.0
    yy = jnp.broadcast_to(cols, (H, W)) / (W - 1) * 2.0 - 1.0
    xx = jnp.broadcast_to(xx[None, None], (B, 1, H, W))
    yy = jnp.broadcast_to(yy[None, None], (B, 1, H, W))
    parts = [x.astype(jnp.float32), xx, yy]
    if with_r:
        parts.append(jnp.sqrt((xx - 0.5) ** 2 + (yy - 0.5) ** 2))
    return jnp.concatenate(parts, axis=1)


def _reference_coord_conv(x, weight, bias, with_r=False):
    xc = _reference_add_coords(x, with_r)
    w2d = weight.reshape(weight.shape[0], -1).astype(jnp.float32)  # 1x1 conv only
    out = jnp.einsum("oc,bchw->bohw", w2d, xc,
                     precision=jax.lax.Precision.HIGHEST)
    return out + bias.astype(jnp.float32)[None, :, None, None]


if __name__ == "__main__":
    key = jax.random.PRNGKey(0)
    B, C, H, W, O = 2, 4, 16, 16, 8
    kx, kw, kw_r, kb, kx2, kx3, kw3 = jax.random.split(key, 7)
    x = jax.random.normal(kx, (B, C, H, W), dtype=jnp.float32)

    # AddCoordinates kernel (with_r = False / True), dtype-preserving output.
    out = jax.block_until_ready(add_coordinates(x, with_r=False))
    assert out.shape == (B, C + 2, H, W) and out.dtype == x.dtype
    assert jnp.allclose(out, _reference_add_coords(x, with_r=False),
                        atol=1e-6, rtol=1e-6)

    out_r = jax.block_until_ready(add_coordinates(x, with_r=True))
    assert out_r.shape == (B, C + 3, H, W)
    assert jnp.allclose(out_r, _reference_add_coords(x, with_r=True),
                        atol=1e-6, rtol=1e-6)

    # Non-power-of-two width exercises the reciprocal + fix-up coordinate path.
    x_np2 = jax.random.normal(kx2, (2, 3, 5, 12), dtype=jnp.float32)
    out_np2 = jax.block_until_ready(add_coordinates(x_np2, with_r=True))
    assert jnp.allclose(out_np2, _reference_add_coords(x_np2, with_r=True),
                        atol=1e-6, rtol=1e-6)

    # Fused CoordConvNet forward (module defaults: 1x1 conv, stride 1, pad 0),
    # small-C VPU-FMA path.
    w = 0.1 * jax.random.normal(kw, (O, C + 2, 1, 1), dtype=jnp.float32)
    b = 0.1 * jax.random.normal(kb, (O,), dtype=jnp.float32)
    y = jax.block_until_ready(coord_conv_net(x, w, b, with_r=False))
    assert y.shape == (B, O, H, W) and y.dtype == x.dtype
    assert jnp.allclose(y, _reference_coord_conv(x, w, b, with_r=False),
                        atol=1e-4, rtol=1e-4)

    w_r = 0.1 * jax.random.normal(kw_r, (O, C + 3, 1, 1), dtype=jnp.float32)
    y_r = jax.block_until_ready(coord_conv_net(x, w_r, b, with_r=True))
    assert jnp.allclose(y_r, _reference_coord_conv(x, w_r, b, with_r=True),
                        atol=1e-4, rtol=1e-4)

    # Larger-C MXU path (C > 16), single image (exercises B == 1 tiling).
    C2 = 24
    x_big = jax.random.normal(kx3, (1, C2, 8, 16), dtype=jnp.float32)
    w_big = 0.1 * jax.random.normal(kw3, (O, C2 + 2, 1, 1), dtype=jnp.float32)
    y_big = jax.block_until_ready(coord_conv_net(x_big, w_big, b, with_r=False))
    assert jnp.allclose(y_big, _reference_coord_conv(x_big, w_big, b, with_r=False),
                        atol=1e-4, rtol=1e-4)

    print("KERNEL_OK")
</pallas_src>

<mosaic_0001>
module attributes {stable_mosaic.version = 11 : i64} {
  func.func @_add_coords_kernel(%arg0: i32, %arg1: i32, %arg2: memref<1x4x256xf32, #tpu.memory_space<vmem>>, %arg3: memref<1x6x256xf32, #tpu.memory_space<vmem>>) attributes {dimension_semantics = [#tpu.dimension_semantics<parallel>, #tpu.dimension_semantics<parallel>], iteration_bounds = array<i64: 2, 1>, scalar_prefetch = 0 : i64, scratch_operands = 0 : i64, tpu.core_type = #tpu.core_type<tc>, window_params = [{transform_indices = @transform_0, window_bounds = array<i64: 1, 4, 256>}, {transform_indices = @transform_1, window_bounds = array<i64: 1, 6, 256>}]} {
    %c0 = arith.constant 0 : index
    %c0_0 = arith.constant 0 : index
    %c0_1 = arith.constant 0 : index
    %0 = vector.load %arg2[%c0, %c0_0, %c0_1] : memref<1x4x256xf32, #tpu.memory_space<vmem>>, vector<1x4x256xf32>
    %c0_2 = arith.constant 0 : index
    %c0_3 = arith.constant 0 : index
    %c0_4 = arith.constant 0 : index
    %1 = vector.load %arg3[%c0_2, %c0_3, %c0_4] : memref<1x6x256xf32, #tpu.memory_space<vmem>>, vector<1x4x256xf32>
    tpu.vector_store %arg3[%c0_2, %c0_3, %c0_4], %0 {strides = array<i32>} : memref<1x6x256xf32, #tpu.memory_space<vmem>>, vector<1x4x256xf32>,
    %2 = tpu.iota {dimensions = array<i32: 1>} : vector<1x256xi32>
    %c256_i32 = arith.constant 256 : i32
    %3 = arith.muli %arg1, %c256_i32 : i32
    %4 = vector.broadcast %3 : i32 to vector<1x256xi32>
    %5 = arith.addi %4, %2 : vector<1x256xi32>
    %c4_i32 = arith.constant 4 : i32
    %6 = vector.broadcast %c4_i32 : i32 to vector<1x256xi32>
    %7 = arith.shrsi %5, %6 : vector<1x256xi32>
    %c15_i32 = arith.constant 15 : i32
    %8 = vector.broadcast %c15_i32 : i32 to vector<1x256xi32>
    %9 = arith.andi %5, %8 : vector<1x256xi32>
    %10 = arith.sitofp %7 : vector<1x256xi32> to vector<1x256xf32>
    %cst = arith.constant 1.500000e+01 : f32
    %11 = vector.broadcast %cst : f32 to vector<1x256xf32>
    %12 = arith.divf %10, %11 : vector<1x256xf32>
    %cst_5 = arith.constant 2.000000e+00 : f32
    %13 = vector.broadcast %cst_5 : f32 to vector<1x256xf32>
    %14 = arith.mulf %12, %13 : vector<1x256xf32>
    %cst_6 = arith.constant 1.000000e+00 : f32
    %15 = vector.broadcast %cst_6 : f32 to vector<1x256xf32>
    %16 = arith.subf %14, %15 : vector<1x256xf32>
    %17 = arith.sitofp %9 : vector<1x256xi32> to vector<1x256xf32>
    %cst_7 = arith.constant 1.500000e+01 : f32
    %18 = vector.broadcast %cst_7 : f32 to vector<1x256xf32>
    %19 = arith.divf %17, %18 : vector<1x256xf32>
    %cst_8 = arith.constant 2.000000e+00 : f32
    %20 = vector.broadcast %cst_8 : f32 to vector<1x256xf32>
    %21 = arith.mulf %19, %20 : vector<1x256xf32>
    %cst_9 = arith.constant 1.000000e+00 : f32
    %22 = vector.broadcast %cst_9 : f32 to vector<1x256xf32>
    %23 = arith.subf %21, %22 : vector<1x256xf32>
    %24 = tpu.concatenate %16, %23 in 0 : vector<1x256xf32>, vector<1x256xf32> -> vector<2x256xf32>
    %25 = vector.shape_cast %24 : vector<2x256xf32> to vector<1x2x256xf32>
    %c0_10 = arith.constant 0 : index
    %c4 = arith.constant 4 : index
    %c0_11 = arith.constant 0 : index
    %26 = vector.load %arg3[%c0_10, %c4, %c0_11] : memref<1x6x256xf32, #tpu.memory_space<vmem>>, vector<1x2x256xf32>
    tpu.vector_store %arg3[%c0_10, %c4, %c0_11], %25 {strides = array<i32>} : memref<1x6x256xf32, #tpu.memory_space<vmem>>, vector<1x2x256xf32>,
    return
  }
  func.func @transform_0(%arg0: i32, %arg1: i32) -> (i32, i32, i32) {
    %c0_i32 = arith.constant 0 : i32
    %c0_i32_0 = arith.constant 0 : i32
    return %arg0, %c0_i32, %arg1 : i32, i32, i32
  }
  func.func @transform_1(%arg0: i32, %arg1: i32) -> (i32, i32, i32) {
    %c0_i32 = arith.constant 0 : i32
    %c0_i32_0 = arith.constant 0 : i32
    return %arg0, %c0_i32, %arg1 : i32, i32, i32
  }
}

</mosaic_0001>

<bundles_post_ra>
// kernel: tpu_custom_call.1
= control target key start
LH: loop header
LB: loop body
LE: loop exit
PB: predicated region body
PF: predicated region fallthrough
CT: control target
= control target key end

     0   :  { %6 = vsyncpa [#allocation3], 0  ;;  %s572_s0 = inlined_call_operand.hbm [shape: f32[2,4,256], index: 0, kind: input, shape index: {}]   ;;  %s573_s1 = inlined_call_operand.vmem [shape: f32[2,6,256], index: 1, kind: output, shape index: {}]  }
   0x1   :  { %8 = vsyncpa [#allocation3 + $0x1], 0  ;;  %s484_s6 = smov 0   ;;  %s486_s7 = smov 0  }
   0x2   :  { %s488_s8 = smov 0   ;;  %s490_s9 = smov 0  }
   0x3   :  { %s492_s10 = smov 0   ;;  %s494_s11 = smov 0  }
   0x4 LB: > { %s314_s12 = sadd.s32 4294967295, %s471_s11   ;;  %s26_s13 = sadd.s32 1, %s467_s10  ;;  %s471_s11 = sphi %s494_s11, %s14_s11   ;;  %s467_s10 = sphi %s492_s10, %s580_s10   ;;  %s463_s9 = sphi %s490_s9, %s579_s9   ;;  %s459_s8 = sphi %s488_s8, %s578_s8   ;;  %s455_s7 = sphi %s486_s7, %s577_s7   ;;  %s451_s6 = sphi %s484_s6, %s576_s6  }
   0x5   : > { %p28_p0 = scmp.ge.s32.totalorder %s26_s13, 2  ;;  %s35_s14 = sadd.s32 1, %s459_s8 }
   0x6   : > { %p42_p1 = scmp.ne.s32.totalorder %s459_s8, %s455_s7  ;;  %p43_p2 = scmp.eq.s32.totalorder %s471_s11, 0 }
   0x7   : > { %s582_s13 = smov (%p28_p0, %s26_s13), 0  ;;  %p48_p4 = scmp.ne.s32.totalorder %s455_s7, %s451_s6 }
   0x8   : > { %p520_p3 = por %p43_p2, %p42_p1  ;;  %s30_s16 = ssub.s32 %s467_s10, %s582_s13 }
   0x9   : > { %p49_p5 = scmp.eq.s32.totalorder %s314_s12, 0  ;;  %p33_p6 = scmp.eq.s32.totalorder %s30_s16, 0 }
   0xa   : > { %p339_p8 = scmp.lt.s32.totalorder %s471_s11, 2  ;;  %s100_s19 = sand.u32 1, %s459_s8  }
   0xb   : > { %p527_p7 = por %p49_p5, %p48_p4  ;;  %s331_s20 = sshll.u32 %s467_s10, 3 }
   0xc   : > { %s533_s18 = scalar_select %p33_p6, %s459_s8, %s35_s14  }
   0xd   : > { %s318_s21 = sshll.u32 %s100_s19, 3  ;;  %s111_s24 = scalar_lea.hbm %s572_s0, %s331_s20 }
   0xe   : > { %s113_s25 = sshll.u32 %s111_s24, 4  ;;  %s104_s26 = scalar_lea.vmem [#allocation2], %s318_s21  ;;  %s114_s25 = int_to_ptr.hbm [resolvable:$true] %s113_s25 }
   0xf   : > { %s115_s27 = sshll.u32 %s104_s26, 4  ;;  %p336_p9 = pnand %p339_p8, %p520_p3  ;;  %s116_s27 = int_to_ptr.vmem [resolvable:$true] %s115_s27 }
  0x10   : > { %p321_p10 = scmp.ge.s32.totalorder %s471_s11, 1  ;;  %p120_p11 = scmp.lt.s32.totalorder %s471_s11, 3 }
  0x11   : > { %s101_s28 = scalar_lea.sflag [#allocation3], %s100_s19 }
  0x12   : > { %338 = dma.hbm_to_vmem [thread:$0]  (!%p336_p9), %s114_s25, 128, %s116_s27, %s101_s28  }
  0x13   : > { %p121_p12 = pnand %p321_p10, %p120_p11 }
  0x14   : > { %s126_s29 = sand.u32 (!%p121_p12), 1, %s455_s7  }
  0x15   : > { %124 = sbr.rel (%p121_p12) target bundleno = 55 (0x37), region = 24  ;;  %s322_s30 = sshll.u32 (!%p121_p12), %s126_s29, 3 }
  0x16   : > { %s127_s2 = scalar_lea.sflag (!%p121_p12), [#allocation3], %s126_s29  ;;  %s130_s3 = scalar_lea.vmem (!%p121_p12), [#allocation2], %s322_s30 }
  0x1a   : > { %446 = dma.done.wait (%p527_p7), %s127_s2, 128  }
  0x1b   : > { %448 = vsyncadd (%p527_p7), %s127_s2, 4294967168  ;;  %v174_v0 = vlaneseq  ;;  %v473_v1 = vmov 15.0   ;;  %p156_p13 = scmp.lt.s32.totalorder %s463_s9, 1  ;;  %v165_v5 = vld [vmem:[%s130_s3] sm:$0xff]  ;;  %vm208_vm1 = vcmask 1040384  }
  0x1c   : > { %389 = vrcp.f32 %v473_v1  ;;  %167 = vst [vmem:[#allocation1] ss:$2 sm:$0xff] %v165_v5 }
  0x1d   : > { %v175_v2 = vand.u32 127, %v174_v0  ;;  %s584_s9 = smov (!%p156_p13, %s463_s9), 1 }
  0x1e   : > { %s332_s4 = sshll.u32 %s584_s9, 4 }
  0x1f   : > { %v176_v3 = vadd.s32 128, %v175_v2  ;;  %v181_v6 = vshra.s32 %v175_v2, 4  ;;  %v183_v8 = vand.u32 15, %v175_v2  ;;  %s163_s12 = scalar_lea.vmem %s573_s1, %s332_s4 }
  0x21   : > { %v182_v9 = vshra.s32 %v176_v3, 4  ;;  %v184_v10 = vand.u32 15, %v176_v3  ;;  %v185_v12 = vcvt.s32.f32 %v181_v6  ;;  %v200_v14 = vcvt.s32.f32 %v183_v8 }
  0x22   : > { %v390_v4 = vpop.eup %389 }
  0x23   : > { %v188_v7 = vmul.f32 15.0, %v390_v4  ;;  %vm192_vm0 = vweird.f32 %v390_v4  ;;  %v186_v15 = vcvt.s32.f32 %v182_v9  ;;  %v201_v16 = vcvt.s32.f32 %v184_v10  ;;  %v168_v18 = vld.sshfl [vmem:[#allocation1] sm:$0xff pattern:$0x75316420] }
  0x24   : > { %v169_v19 = vld.sshfl [vmem:[#allocation1 + $0x8] sm:$0xff pattern:$0x75316420]  ;;  %172 = vst [vmem:[%s163_s12] sm:$0xf] %v168_v18 }
  0x25   : > { %v189_v11 = vsub.f32 1.0, %v188_v7  ;;  %173 = vst [vmem:[%s163_s12 + $0x8] sm:$0xf] %v169_v19 }
  0x27   : > { %v190_v13 = vmul.f32 %v390_v4, %v189_v11 }
  0x29   : > { %v191_v17 = vadd.f32 %v390_v4, %v190_v13 }
  0x2b   : > { %v193_v20 = vsel %vm192_vm0, %v390_v4, %v191_v17 }
  0x2c   : > { %v194_v21 = vmul.f32 %v193_v20, %v185_v12  ;;  %v202_v22 = vmul.f32 %v200_v14, %v193_v20  ;;  %v195_v23 = vmul.f32 %v193_v20, %v186_v15  ;;  %v203_v24 = vmul.f32 %v201_v16, %v193_v20 }
  0x2e   : > { %v196_v25 = vmul.f32 2.0, %v194_v21  ;;  %v204_v26 = vmul.f32 2.0, %v202_v22  ;;  %v197_v27 = vmul.f32 2.0, %v195_v23  ;;  %v205_v28 = vmul.f32 2.0, %v203_v24 }
  0x30   : > { %v325_v29 = vadd.f32 -1.0, %v196_v25  ;;  %v327_v30 = vadd.f32 -1.0, %v204_v26  ;;  %v326_v31 = vadd.f32 -1.0, %v197_v27  ;;  %v328_v32 = vadd.f32 -1.0, %v205_v28 }
  0x32   : > { %v209_v33 = vsel %vm208_vm1, %v325_v29, %v327_v30  ;;  %v210_v34 = vsel %vm208_vm1, %v326_v31, %v328_v32 }
  0x33   : > { %v213_v35 = vrot.slane %v209_v33, 4  ;;  %v214_v36 = vrot.slane %v210_v34, 4 }
  0x35   : > { %217 = vst [vmem:[%s163_s12] sm:$0x30] %v213_v35 }
  0x36   : > { %218 = vst [vmem:[%s163_s12 + $0x8] sm:$0x30] %v214_v36 }
  0x37 PF: > { %s14_s11 = sadd.s32 1, %s471_s11   ;;  %s576_s6 = smov %s455_s7 }
  0x38   : > { %p11_p0 = scmp.ge.s32.totalorder %s14_s11, 4   ;;  %s577_s7 = smov %s459_s8 }
  0x39   : > { %s578_s8 = smov %s533_s18  ;;  %s579_s9 = smov %s467_s10 }
  0x3a   : > { %s580_s10 = smov %s582_s13  ;;  %13 = sbr.rel (!%p11_p0) target bundleno = 4 (0x4), region = 64 }
  0x3f   :  { %249 = vsyncpa [#allocation3], 1 }
  0x40   :  { %251 = vsyncpa [#allocation3 + $0x1], 1 }

</bundles_post_ra>
